<compile_context>
chip_gen: v6e
topology: v6e:2x2x1
jax: 0.10.0
libtpu: 0.0.40
codegen_flags: <defaults>
</compile_context>

<pallas_src>
import functools

import jax
import jax.numpy as jnp
from jax import lax
from jax.experimental import pallas as pl
from jax.experimental.pallas import tpu as pltpu


def _round_up(v, m):
    return (v + m - 1) // m * m


# ----------------------------------------------------------------------------
# Kernel 1: BatchNorm affine + ReLU + Conv3d zero-padding, fused.
#   grid = (N, D + 2*pt).  Each step writes one full padded (Hp, Wp, C) plane:
#   depth-halo planes are all zeros (pl.when), interior planes get the
#   normalized/ReLU'd data written into the (ph, pw) offset window.
# ----------------------------------------------------------------------------
def _bn_relu_pad_kernel(x_ref, s_ref, b_ref, o_ref, *, pt, ph, pw, d, h, w):
    # x_ref: (H, W, C) source plane; s_ref/b_ref: (1, C); o_ref: (Hp, Wp, C)
    if pt or ph or pw:
        o_ref[...] = jnp.zeros_like(o_ref)           # zero halo (and interior)
    dp = pl.program_id(1)

    @pl.when(jnp.logical_and(dp >= pt, dp < pt + d))
    def _():
        y = x_ref[...].astype(jnp.float32) * s_ref[...] + b_ref[...]
        o_ref[ph:ph + h, pw:pw + w, :] = jnp.maximum(y, 0.0).astype(o_ref.dtype)


def _bn_relu_pad(x_ndhwc, scale, shift, pad, out_dtype):
    n, d, h, w, c = x_ndhwc.shape
    pt, ph, pw = pad
    dpd, hpd, wpd = d + 2 * pt, h + 2 * ph, w + 2 * pw
    kern = functools.partial(_bn_relu_pad_kernel,
                             pt=pt, ph=ph, pw=pw, d=d, h=h, w=w)
    return pl.pallas_call(
        kern,
        out_shape=jax.ShapeDtypeStruct((n, dpd, hpd, wpd, c), out_dtype),
        grid=(n, dpd),
        in_specs=[
            # halo planes read a clamped (valid) plane; its data is ignored.
            pl.BlockSpec((None, None, h, w, c),
                         lambda ni, di: (ni, jnp.clip(di - pt, 0, d - 1), 0, 0, 0)),
            pl.BlockSpec((1, c), lambda ni, di: (0, 0)),
            pl.BlockSpec((1, c), lambda ni, di: (0, 0)),
        ],
        out_specs=pl.BlockSpec((None, None, hpd, wpd, c),
                               lambda ni, di: (ni, di, 0, 0, 0)),
        compiler_params=pltpu.CompilerParams(
            dimension_semantics=("parallel", "parallel")),
    )(x_ndhwc, scale.reshape(1, c), shift.reshape(1, c))


# ----------------------------------------------------------------------------
# Kernel 2: Conv3d.  grid = (N, Do).  The full padded (Dp, Hp, Wp, C) sample is
# VMEM-resident (constant block index along Do -> DMA'd once per n); all
# kt*kh*kw taps are folded into a single MXU contraction per group.
# ----------------------------------------------------------------------------
def _conv_kernel(x_ref, w_ref, o_ref, *, kt, kh, kw, g, cg, ho, wo, st, sh, sw):
    # x_ref: (Dp, Hp, Wp, C); w_ref: (g, K, Wcols), K = kt*kh*kw*cg
    # o_ref: (Ho*Wo, Fp) f32, Fp = round_up(g*fg, 128) -> lane-dense store
    d0 = pl.program_id(1) * st
    fgc = w_ref.shape[2]                  # per-group output cols (== Fp if g==1)
    fp = o_ref.shape[-1]
    for grp in range(g):
        ch = slice(None) if g == 1 else slice(grp * cg, (grp + 1) * cg)
        taps = []
        for a in range(kt):
            for b in range(kh):
                rs = pl.ds(b, ho) if sh == 1 else pl.ds(b, ho, sh)
                for e in range(kw):
                    cs = pl.ds(e, wo) if sw == 1 else pl.ds(e, wo, sw)
                    taps.append(x_ref[d0 + a, rs, cs, ch])     # (Ho, Wo, Cg)
        patch = taps[0] if len(taps) == 1 else jnp.concatenate(taps, axis=-1)
        patch = patch.reshape(ho * wo, kt * kh * kw * cg)       # (Ho*Wo, K)
        res = jnp.dot(patch, w_ref[grp], preferred_element_type=jnp.float32)
        if g == 1:
            o_ref[...] = res.astype(o_ref.dtype)                # one full store
        else:
            o_ref[:, grp * fgc:(grp + 1) * fgc] = res.astype(o_ref.dtype)
    if g > 1 and g * fgc < fp:
        o_ref[:, g * fgc:] = jnp.zeros((ho * wo, fp - g * fgc), o_ref.dtype)


# ----------------------------------------------------------------------------
# BN_AC_CONV3D forward
# ----------------------------------------------------------------------------
def bn_ac_conv3d(x, gamma, beta, weight, *, kernel, pad, stride, groups,
                 eps=1e-5, conv_in_bf16=True):
    # x: (N, C, D, H, W) NCDHW ; weight: (F, C//g, kt, kh, kw) OIDHW, bias=False
    n, c, d, h, w = x.shape
    f = weight.shape[0]
    g = groups
    cg, fg = c // g, f // g
    kt, kh, kw = kernel
    pt, ph, pw = pad
    st, sh, sw = stride
    do = (d + 2 * pt - kt) // st + 1
    ho = (h + 2 * ph - kh) // sh + 1
    wo = (w + 2 * pw - kw) // sw + 1
    f_pad = _round_up(f, 128)
    kdim = kt * kh * kw * cg

    # ---- batch statistics (training-mode BatchNorm3d, biased var): XLA ----
    mean = jnp.mean(x, axis=(0, 2, 3, 4), dtype=jnp.float32)
    var = jnp.mean(jnp.square(x.astype(jnp.float32) - mean.reshape(1, c, 1, 1, 1)),
                   axis=(0, 2, 3, 4))
    scale = gamma.astype(jnp.float32) * lax.rsqrt(var + eps)
    shift = beta.astype(jnp.float32) - mean * scale

    act_dtype = jnp.bfloat16 if conv_in_bf16 else jnp.float32

    # ---- normalize + ReLU + zero-padding (one fused Pallas pass) ----
    x_ndhwc = jnp.transpose(x, (0, 2, 3, 4, 1))     # channel-minor for the MXU
    hp = _bn_relu_pad(x_ndhwc, scale, shift, (pt, ph, pw), act_dtype)
    dpd, hpd, wpd = d + 2 * pt, h + 2 * ph, w + 2 * pw

    # ---- weights: (F, Cg, kt, kh, kw) -> (g, K, cols), tap order (kt,kh,kw,cg) ----
    w_g = weight.reshape(g, fg, cg, kt, kh, kw)
    w_g = jnp.transpose(w_g, (0, 3, 4, 5, 2, 1)).reshape(g, kdim, fg)
    w_g = w_g.astype(act_dtype)
    if g == 1:
        w_pack = jnp.pad(w_g, ((0, 0), (0, 0), (0, f_pad - fg)))
        wcols = f_pad
    else:
        w_pack = w_g
        wcols = fg

    # ---- VMEM budget (resident sample + packed weight + one output block) ----
    isz = jnp.dtype(act_dtype).itemsize
    x_blk = dpd * hpd * wpd * c * isz
    w_blk = g * kdim * wcols * isz
    o_blk = ho * wo * f_pad * 4
    tmp = 2 * ho * wo * (kdim + f_pad) * 4
    vmem_est = 2 * (x_blk + w_blk + o_blk) + tmp + (4 << 20)
    # v5e/v6e: 128 MiB physical VMEM; v7x: 64 MiB (tile Ho there for big planes).
    vmem_limit = int(min(max(vmem_est, 16 << 20), 100 << 20))

    kern = functools.partial(_conv_kernel, kt=kt, kh=kh, kw=kw, g=g, cg=cg,
                             ho=ho, wo=wo, st=st, sh=sh, sw=sw)
    out = pl.pallas_call(
        kern,
        out_shape=jax.ShapeDtypeStruct((n, do, ho * wo, f_pad), jnp.float32),
        grid=(n, do),
        in_specs=[
            # whole padded sample; constant block index along Do => one DMA per n
            pl.BlockSpec((None, dpd, hpd, wpd, c),
                         lambda ni, zi: (ni, 0, 0, 0, 0)),
            # full packed weight; constant block index => DMA'd once
            pl.BlockSpec((g, kdim, wcols), lambda ni, zi: (0, 0, 0)),
        ],
        out_specs=pl.BlockSpec((None, None, ho * wo, f_pad),
                               lambda ni, zi: (ni, zi, 0, 0)),
        compiler_params=pltpu.CompilerParams(
            dimension_semantics=("parallel", "parallel"),
            vmem_limit_bytes=vmem_limit),
    )(hp, w_pack)

    # strip lane padding, restore NCDHW
    out = out[..., :f].reshape(n, do, ho, wo, f)
    return jnp.transpose(out, (0, 4, 1, 2, 3))


# ----------------------------------------------------------------------------
# Pure-JAX reference (correctness check)
# ----------------------------------------------------------------------------
def _reference(x, gamma, beta, weight, *, kernel, pad, stride, groups, eps=1e-5):
    mean = jnp.mean(x, axis=(0, 2, 3, 4), keepdims=True)
    var = jnp.mean((x - mean) ** 2, axis=(0, 2, 3, 4), keepdims=True)
    hh = (x - mean) * lax.rsqrt(var + eps)
    hh = hh * gamma.reshape(1, -1, 1, 1, 1) + beta.reshape(1, -1, 1, 1, 1)
    hh = jnp.maximum(hh, 0.0)
    return lax.conv_general_dilated(
        hh, weight, window_strides=stride,
        padding=[(pad[0], pad[0]), (pad[1], pad[1]), (pad[2], pad[2])],
        dimension_numbers=("NCDHW", "OIDHW", "NCDHW"),
        feature_group_count=groups,
        precision=lax.Precision.HIGHEST,
    )


if __name__ == "__main__":
    key = jax.random.PRNGKey(0)
    k1, k2, k3, k4 = jax.random.split(key, 4)

    # Case 1: num_in=4 -> num_filter=8, kernel=(3,3,3), pad=(1,1,1), stride=1, g=1
    N, C, D, H, W = 2, 4, 4, 8, 8
    F = 8
    kernel, pad, stride, g = (3, 3, 3), (1, 1, 1), (1, 1, 1), 1
    x = jax.random.normal(k1, (N, C, D, H, W), jnp.float32)
    gamma = 1.0 + 0.1 * jax.random.normal(k2, (C,), jnp.float32)
    beta = 0.1 * jax.random.normal(k3, (C,), jnp.float32)
    weight = 0.1 * jax.random.normal(k4, (F, C // g, *kernel), jnp.float32)

    ref = jax.block_until_ready(
        _reference(x, gamma, beta, weight,
                   kernel=kernel, pad=pad, stride=stride, groups=g))

    # f32 MXU path (tight check)
    out32 = jax.block_until_ready(
        bn_ac_conv3d(x, gamma, beta, weight, kernel=kernel, pad=pad,
                     stride=stride, groups=g, conv_in_bf16=False))
    assert out32.shape == ref.shape, (out32.shape, ref.shape)
    assert jnp.allclose(out32, ref, atol=5e-3, rtol=5e-3), float(
        jnp.max(jnp.abs(out32 - ref)))

    # default bf16-MXU / f32-accumulate path
    out_bf = jax.block_until_ready(
        bn_ac_conv3d(x, gamma, beta, weight, kernel=kernel, pad=pad,
                     stride=stride, groups=g))
    assert out_bf.shape == ref.shape, (out_bf.shape, ref.shape)
    assert jnp.allclose(out_bf, ref, atol=2e-2, rtol=2e-2), float(
        jnp.max(jnp.abs(out_bf - ref)))

    # Case 2: grouped conv (g=2), kernel=(1,3,3), pad=(0,1,1) — exercises the
    # group path and the total-F lane padding.
    g2 = 2
    kernel2, pad2, stride2 = (1, 3, 3), (0, 1, 1), (1, 1, 1)
    k5, _ = jax.random.split(k4)
    w2 = 0.1 * jax.random.normal(k5, (F, C // g2, *kernel2), jnp.float32)
    ref2 = jax.block_until_ready(
        _reference(x, gamma, beta, w2, kernel=kernel2, pad=pad2,
                   stride=stride2, groups=g2))
    out2 = jax.block_until_ready(
        bn_ac_conv3d(x, gamma, beta, w2, kernel=kernel2, pad=pad2,
                     stride=stride2, groups=g2, conv_in_bf16=False))
    assert out2.shape == ref2.shape, (out2.shape, ref2.shape)
    assert jnp.allclose(out2, ref2, atol=5e-3, rtol=5e-3), float(
        jnp.max(jnp.abs(out2 - ref2)))

    print("KERNEL_OK")
</pallas_src>

<mosaic_0001>
module attributes {stable_mosaic.version = 11 : i64} {
  func.func @_bn_relu_pad_kernel(%arg0: i32, %arg1: i32, %arg2: memref<1x1x8x8x4xf32, #tpu.memory_space<vmem>>, %arg3: memref<1x4xf32, #tpu.memory_space<vmem>>, %arg4: memref<1x4xf32, #tpu.memory_space<vmem>>, %arg5: memref<1x1x10x10x4xf32, #tpu.memory_space<vmem>>) attributes {dimension_semantics = [#tpu.dimension_semantics<parallel>, #tpu.dimension_semantics<parallel>], iteration_bounds = array<i64: 2, 6>, scalar_prefetch = 0 : i64, scratch_operands = 0 : i64, tpu.core_type = #tpu.core_type<tc>, window_params = [{transform_indices = @transform_0, window_bounds = array<i64: 1, 1, 8, 8, 4>}, {pipeline_mode = #tpu.pipeline_mode<synchronous>, transform_indices = @transform_1, window_bounds = array<i64: 1, 4>}, {pipeline_mode = #tpu.pipeline_mode<synchronous>, transform_indices = @transform_2, window_bounds = array<i64: 1, 4>}, {transform_indices = @transform_3, window_bounds = array<i64: 1, 1, 10, 10, 4>}]} {
    %cst = arith.constant 0.000000e+00 : f32
    %0 = vector.broadcast %cst : f32 to vector<10x10x4xf32>
    %c0 = arith.constant 0 : index
    %c0_0 = arith.constant 0 : index
    %c0_1 = arith.constant 0 : index
    %c0_2 = arith.constant 0 : index
    %c0_3 = arith.constant 0 : index
    %1 = vector.load %arg5[%c0, %c0_0, %c0_1, %c0_2, %c0_3] : memref<1x1x10x10x4xf32, #tpu.memory_space<vmem>>, vector<1x1x10x10x4xf32>
    %2 = vector.shape_cast %1 : vector<1x1x10x10x4xf32> to vector<10x10x4xf32>
    %3 = vector.shape_cast %0 : vector<10x10x4xf32> to vector<1x1x10x10x4xf32>
    tpu.vector_store %arg5[%c0, %c0_0, %c0_1, %c0_2, %c0_3], %3 {strides = array<i32>} : memref<1x1x10x10x4xf32, #tpu.memory_space<vmem>>, vector<1x1x10x10x4xf32>,
    %c1_i32 = arith.constant 1 : i32
    %4 = arith.cmpi sge, %arg1, %c1_i32 : i32
    %c5_i32 = arith.constant 5 : i32
    %5 = arith.cmpi slt, %arg1, %c5_i32 : i32
    %6 = arith.andi %4, %5 : i1
    %7 = arith.extui %6 : i1 to i32
    %c0_i32 = arith.constant 0 : i32
    %8 = arith.cmpi ne, %7, %c0_i32 : i32
    scf.if %8 {
      %c0_4 = arith.constant 0 : index
      %c0_5 = arith.constant 0 : index
      %c0_6 = arith.constant 0 : index
      %c0_7 = arith.constant 0 : index
      %c0_8 = arith.constant 0 : index
      %9 = vector.load %arg2[%c0_4, %c0_5, %c0_6, %c0_7, %c0_8] : memref<1x1x8x8x4xf32, #tpu.memory_space<vmem>>, vector<1x1x8x8x4xf32>
      %10 = vector.shape_cast %9 : vector<1x1x8x8x4xf32> to vector<8x8x4xf32>
      %c0_9 = arith.constant 0 : index
      %c0_10 = arith.constant 0 : index
      %11 = vector.load %arg3[%c0_9, %c0_10] : memref<1x4xf32, #tpu.memory_space<vmem>>, vector<1x4xf32>
      %12 = vector.shape_cast %11 : vector<1x4xf32> to vector<1x1x4xf32>
      %13 = vector.broadcast %12 : vector<1x1x4xf32> to vector<8x8x4xf32>
      %14 = arith.mulf %10, %13 : vector<8x8x4xf32>
      %c0_11 = arith.constant 0 : index
      %c0_12 = arith.constant 0 : index
      %15 = vector.load %arg4[%c0_11, %c0_12] : memref<1x4xf32, #tpu.memory_space<vmem>>, vector<1x4xf32>
      %16 = vector.shape_cast %15 : vector<1x4xf32> to vector<1x1x4xf32>
      %17 = vector.broadcast %16 : vector<1x1x4xf32> to vector<8x8x4xf32>
      %18 = arith.addf %14, %17 : vector<8x8x4xf32>
      %cst_13 = arith.constant 0.000000e+00 : f32
      %19 = vector.broadcast %cst_13 : f32 to vector<8x8x4xf32>
      %20 = arith.maximumf %18, %19 : vector<8x8x4xf32>
      %c0_14 = arith.constant 0 : index
      %c0_15 = arith.constant 0 : index
      %c1 = arith.constant 1 : index
      %c1_16 = arith.constant 1 : index
      %c0_17 = arith.constant 0 : index
      %21 = vector.load %arg5[%c0_14, %c0_15, %c1, %c1_16, %c0_17] : memref<1x1x10x10x4xf32, #tpu.memory_space<vmem>>, vector<1x1x8x8x4xf32>
      %22 = vector.shape_cast %21 : vector<1x1x8x8x4xf32> to vector<8x8x4xf32>
      %23 = vector.shape_cast %20 : vector<8x8x4xf32> to vector<1x1x8x8x4xf32>
      tpu.vector_store %arg5[%c0_14, %c0_15, %c1, %c1_16, %c0_17], %23 {strides = array<i32>} : memref<1x1x10x10x4xf32, #tpu.memory_space<vmem>>, vector<1x1x8x8x4xf32>,
    } else {
    }
    return
  }
  func.func @transform_0(%arg0: i32, %arg1: i32) -> (i32, i32, i32, i32, i32) {
    %c1_i32 = arith.constant 1 : i32
    %0 = arith.subi %arg1, %c1_i32 : i32
    %c0_i32 = arith.constant 0 : i32
    %c3_i32 = arith.constant 3 : i32
    %1 = arith.maxsi %c0_i32, %0 : i32
    %2 = arith.minsi %c3_i32, %1 : i32
    %c0_i32_0 = arith.constant 0 : i32
    %c0_i32_1 = arith.constant 0 : i32
    %c0_i32_2 = arith.constant 0 : i32
    %c0_i32_3 = arith.constant 0 : i32
    return %arg0, %2, %c0_i32_0, %c0_i32_1, %c0_i32_2 : i32, i32, i32, i32, i32
  }
  func.func @transform_1(%arg0: i32, %arg1: i32) -> (i32, i32) {
    %c0_i32 = arith.constant 0 : i32
    %c0_i32_0 = arith.constant 0 : i32
    %c0_i32_1 = arith.constant 0 : i32
    return %c0_i32, %c0_i32_0 : i32, i32
  }
  func.func @transform_2(%arg0: i32, %arg1: i32) -> (i32, i32) {
    %c0_i32 = arith.constant 0 : i32
    %c0_i32_0 = arith.constant 0 : i32
    %c0_i32_1 = arith.constant 0 : i32
    return %c0_i32, %c0_i32_0 : i32, i32
  }
  func.func @transform_3(%arg0: i32, %arg1: i32) -> (i32, i32, i32, i32, i32) {
    %c0_i32 = arith.constant 0 : i32
    %c0_i32_0 = arith.constant 0 : i32
    %c0_i32_1 = arith.constant 0 : i32
    %c0_i32_2 = arith.constant 0 : i32
    return %arg0, %arg1, %c0_i32, %c0_i32_0, %c0_i32_1 : i32, i32, i32, i32, i32
  }
}

</mosaic_0001>

<bundles_post_ra>
// kernel: tpu_custom_call.1
= control target key start
LH: loop header
LB: loop body
LE: loop exit
PB: predicated region body
PF: predicated region fallthrough
CT: control target
= control target key end

     0   :  { %s569_s12 = smov 0   ;;  %s571_s13 = smov 0   ;;  %s696_s0 = inlined_call_operand.vmem [shape: f32[2,4,8,8,4], index: 0, kind: input, shape index: {}]   ;;  %s697_s1 = inlined_call_operand.vmem [shape: f32[1,4], index: 1, kind: input, shape index: {}]   ;;  %s698_s2 = inlined_call_operand.vmem [shape: f32[1,4], index: 2, kind: input, shape index: {}]   ;;  %s699_s3 = inlined_call_operand.vmem [shape: f32[2,6,10,10,4], index: 3, kind: output, shape index: {}]  }
   0x1   :  { %s573_s14 = smov 0   ;;  %s575_s15 = smov 0  }
   0x2   :  { %s577_s16 = smov 0  }
   0x3 LB: > { %s22_s17 = sadd.s32 1, %s538_s14  ;;  %s25_s18 = sadd.s32 1, %s542_s15  ;;  %s546_s16 = sphi %s577_s16, %s13_s16   ;;  %s542_s15 = sphi %s575_s15, %s704_s15   ;;  %s538_s14 = sphi %s573_s14, %s703_s14   ;;  %s534_s13 = sphi %s571_s13, %s702_s13   ;;  %s530_s12 = sphi %s569_s12, %s701_s12  }
   0x4   : > { %p23_p0 = scmp.ge.s32.totalorder %s22_s17, 6  ;;  %p436_p1 = scmp.ge.s32.totalorder %s546_s16, 1 }
   0x5   : > { %p177_p2 = scmp.lt.s32.totalorder %s546_s16, 13 }
   0x6   : > { %s706_s17 = smov (%p23_p0, %s22_s17), 0  ;;  %s708_s18 = smov (!%p23_p0, %s25_s18), %s542_s15 }
   0x7   : > { %p178_p3 = pnand %p436_p1, %p177_p2  ;;  %p27_p4 = scmp.ge.s32.totalorder %s708_s18, 2 }
   0x8   : > { %s437_s19 = sadd.s32 (!%p178_p3), 4294967295, %s530_s12  ;;  %p219_p5 = scmp.lt.s32.totalorder (!%p178_p3), %s534_s13, 1 }
   0x9   : > { %s710_s18 = smov (%p27_p4, %s708_s18), 0  ;;  %181 = sbr.rel (%p178_p3) target bundleno = 45 (0x2d), region = 32 }
   0xa   : > { %p215_p6 = scmp.gt.s32.totalorder (!%p178_p3), %s437_s19, 0  ;;  %p438_p7 = scmp.lt.s32.totalorder (!%p178_p3), %s437_s19, 3 }
   0xb   : > { %p235_p8 = scmp.lt.s32.totalorder (!%p178_p3), %s530_s12, 5  ;;  %p264_p10 = scmp.ge.s32.totalorder (!%p178_p3), %s530_s12, 1 }
   0xd   : > { %p605_p11 = pnand (!%p178_p3), %p264_p10, %p235_p8 }
   0xe   : > { %s712_s13 = smov (!%p219_p5, %s534_s13), 1  ;;  %s714_s19 = smov (!%p215_p6, %s437_s19), 0  ;;  %vm242_vm0 = vcmask 31744   ;;  %vm244_vm1 = vcmask 25600   ;;  %v548_v0 = vmov 0.0  }
   0xf   : > { %s444_s20 = sshll.u32 %s712_s13, 5  ;;  %s716_s19 = smov (!%p438_p7, %s714_s19), 3 }
  0x10   : > { %s236_s21 = scalar_select %p235_p8, %s530_s12, 5 }
  0x11   : > { %p221_p9 = scmp.lt.s32.totalorder %s716_s19, 3  ;;  %s466_s22 = smul.u32 120, %s712_s13 }
  0x12   : > { %s465_s23 = smul.u32 20, %s236_s21 }
  0x13   : > { %s718_s19 = smov (!%p221_p9, %s716_s19), 3 }
  0x14   : > { %s239_s24 = sadd.s32 %s466_s22, %s465_s23  ;;  %s443_s26 = sshll.u32 %s718_s19, 3 }
  0x15   : > { %s446_s27 = sshll.u32 %s239_s24, 3  ;;  %s225_s28 = sadd.s32 %s444_s20, %s443_s26 }
  0x16   : > { %s612_s4 = scalar_lea.vmem %s699_s3, %s446_s27  ;;  %s445_s5 = sshll.u32 %s225_s28, 3 }
  0x17   : > { %243 = vst.msk [vmem:[%s612_s4] sm:$0xff] %vm242_vm0, %v548_v0  ;;  %246 = vst.msk [vmem:[%s612_s4 + $0x10] sm:$0xff] %vm242_vm0, %v548_v0  ;;  %s227_s8 = scalar_lea.vmem %s696_s0, %s445_s5 }
  0x18   : > { %248 = vst.msk [vmem:[%s612_s4 + $0x20] sm:$0xff] %vm242_vm0, %v548_v0  ;;  %250 = vst.msk [vmem:[%s612_s4 + $0x30] sm:$0xff] %vm242_vm0, %v548_v0 }
  0x19   : > { %252 = vst.msk [vmem:[%s612_s4 + $0x40] sm:$0xff] %vm242_vm0, %v548_v0  ;;  %254 = vst.msk [vmem:[%s612_s4 + $0x50] sm:$0xff] %vm242_vm0, %v548_v0 }
  0x1a   : > { %256 = vst.msk [vmem:[%s612_s4 + $0x60] sm:$0xff] %vm242_vm0, %v548_v0  ;;  %258 = vst.msk [vmem:[%s612_s4 + $0x70] sm:$0xff] %vm242_vm0, %v548_v0 }
  0x1b   : > { %260 = vst.msk [vmem:[%s612_s4 + $0x80] sm:$0xff] %vm242_vm0, %v548_v0  ;;  %262 = vst.msk [vmem:[%s612_s4 + $0x90] sm:$0xff] %vm242_vm0, %v548_v0 }
  0x1c   : > { %245 = vst.msk [vmem:[%s612_s4 + $0x8] sm:$0x3] %vm244_vm1, %v548_v0  ;;  %247 = vst.msk [vmem:[%s612_s4 + $0x18] sm:$0x3] %vm244_vm1, %v548_v0  ;;  %269 = sbr.rel (%p605_p11) target bundleno = 45 (0x2d), region = 36 }
  0x1d   : > { %249 = vst.msk [vmem:[%s612_s4 + $0x28] sm:$0x3] %vm244_vm1, %v548_v0  ;;  %251 = vst.msk [vmem:[%s612_s4 + $0x38] sm:$0x3] %vm244_vm1, %v548_v0 }
  0x1e   : > { %253 = vst.msk [vmem:[%s612_s4 + $0x48] sm:$0x3] %vm244_vm1, %v548_v0  ;;  %255 = vst.msk [vmem:[%s612_s4 + $0x58] sm:$0x3] %vm244_vm1, %v548_v0 }
  0x1f   : > { %257 = vst.msk [vmem:[%s612_s4 + $0x68] sm:$0x3] %vm244_vm1, %v548_v0  ;;  %259 = vst.msk [vmem:[%s612_s4 + $0x78] sm:$0x3] %vm244_vm1, %v548_v0 }
  0x20   : > { %261 = vst.msk [vmem:[%s612_s4 + $0x88] sm:$0x3] %vm244_vm1, %v548_v0  ;;  %263 = vst.msk [vmem:[%s612_s4 + $0x98] sm:$0x3] %vm244_vm1, %v548_v0 }
  0x21   : > { %v270_v1 = vld [vmem:[%s227_s8] sm:$0xff]  ;;  %v271_v5 = vld [vmem:[%s227_s8 + $0x8] sm:$0xff]  ;;  %v272_v6 = vld [vmem:[%s227_s8 + $0x10] sm:$0xff] }
  0x22   : > { %v447_v2 = vld [vmem:[%s697_s1] ss:$0 sm:$0xff]  ;;  %v273_v7 = vld [vmem:[%s227_s8 + $0x18] sm:$0xff]  ;;  %v275_v12 = vld [vmem:[%s227_s8 + $0x28] sm:$0xff] }
  0x23   : > { %v448_v3 = vld [vmem:[%s698_s2] ss:$0 sm:$0xff]  ;;  %v285_v4 = vmul.f32 %v447_v2, %v270_v1  ;;  %v286_v8 = vmul.f32 %v447_v2, %v271_v5  ;;  %v287_v9 = vmul.f32 %v447_v2, %v272_v6  ;;  %v288_v10 = vmul.f32 %v447_v2, %v273_v7  ;;  %v276_v13 = vld [vmem:[%s227_s8 + $0x30] sm:$0xff]  ;;  %v277_v18 = vld [vmem:[%s227_s8 + $0x38] sm:$0xff] }
  0x24   : > { %v274_v11 = vld [vmem:[%s227_s8 + $0x20] sm:$0xff]  ;;  %v290_v16 = vmul.f32 %v447_v2, %v275_v12  ;;  %v291_v17 = vmul.f32 %v447_v2, %v276_v13  ;;  %v292_v22 = vmul.f32 %v447_v2, %v277_v18 }
  0x25   : > { %v300_v14 = vadd.f32 %v448_v3, %v285_v4  ;;  %v289_v15 = vmul.f32 %v447_v2, %v274_v11  ;;  %v301_v19 = vadd.f32 %v448_v3, %v286_v8  ;;  %v302_v20 = vadd.f32 %v448_v3, %v287_v9 }
  0x26   : > { %v303_v21 = vadd.f32 %v448_v3, %v288_v10  ;;  %v305_v25 = vadd.f32 %v448_v3, %v290_v16  ;;  %v306_v26 = vadd.f32 %v448_v3, %v291_v17  ;;  %v307_v30 = vadd.f32 %v448_v3, %v292_v22 }
  0x27   : > { %v308_v23 = vmax.f32 %v300_v14, 0.0  ;;  %v304_v24 = vadd.f32 %v448_v3, %v289_v15  ;;  %v309_v27 = vmax.f32 %v301_v19, 0.0  ;;  %v310_v28 = vmax.f32 %v302_v20, 0.0 }
  0x28   : > { %v311_v29 = vmax.f32 %v303_v21, 0.0  ;;  %v313_v32 = vmax.f32 %v305_v25, 0.0  ;;  %v314_v33 = vmax.f32 %v306_v26, 0.0  ;;  %v315_v34 = vmax.f32 %v307_v30, 0.0 }
  0x29   : > { %449 = vst.msk [vmem:[%s612_s4 + $0x11] sm:$0xff] %vm242_vm0, %v308_v23  ;;  %v312_v31 = vmax.f32 %v304_v24, 0.0  ;;  %450 = vst.msk [vmem:[%s612_s4 + $0x21] sm:$0xff] %vm242_vm0, %v309_v27 }
  0x2a   : > { %451 = vst.msk [vmem:[%s612_s4 + $0x31] sm:$0xff] %vm242_vm0, %v310_v28  ;;  %452 = vst.msk [vmem:[%s612_s4 + $0x41] sm:$0xff] %vm242_vm0, %v311_v29 }
  0x2b   : > { %453 = vst.msk [vmem:[%s612_s4 + $0x51] sm:$0xff] %vm242_vm0, %v312_v31  ;;  %454 = vst.msk [vmem:[%s612_s4 + $0x61] sm:$0xff] %vm242_vm0, %v313_v32 }
  0x2c   : > { %455 = vst.msk [vmem:[%s612_s4 + $0x71] sm:$0xff] %vm242_vm0, %v314_v33  ;;  %456 = vst.msk [vmem:[%s612_s4 + $0x81] sm:$0xff] %vm242_vm0, %v315_v34 }
  0x2d PF: > { %s13_s16 = sadd.s32 1, %s546_s16   ;;  %s701_s12 = smov %s538_s14 }
  0x2e   : > { %p10_p12 = scmp.ge.s32.totalorder %s13_s16, 14   ;;  %s702_s13 = smov %s542_s15 }
  0x2f   : > { %s703_s14 = smov %s706_s17  ;;  %s704_s15 = smov %s710_s18 }
  0x30   :  { %12 = sbr.rel (!%p10_p12) target bundleno = 3 (0x3), region = 67 }

</bundles_post_ra>
